<compile_context>
chip_gen: v6e
topology: v6e:2x2x1
jax: 0.10.0
libtpu: 0.0.40
codegen_flags: <defaults>
</compile_context>

<pallas_src>
import functools

import jax
import jax.numpy as jnp
import numpy as np
from jax import lax
from jax.experimental import pallas as pl
from jax.experimental.pallas import tpu as pltpu

BETA = 0.9
THRESHOLD = 1.0

_LANE = 512          # lane-dense output width (multiple of 128)
_MAX_TILE_R = 128    # sublane rows per spatial tile (multiple of 8/16)
_MAX_TT = 8          # timesteps processed per grid step


def _leaky_time_kernel(x_ref, spk_ref, mem_ref, *, beta, threshold):
    """One grid step == TT time steps for one spatial tile.

    x_ref/spk_ref: (TT, tile_R, LANE) blocks.  mem_ref: (tile_R, LANE) f32
    scratch persisting across the (inner, sequential) time-block axis.
    """
    tb = pl.program_id(1)  # time-block index (innermost / "arbitrary")

    @pl.when(tb == 0)
    def _init():
        # New spatial tile -> membrane starts at zero.
        mem_ref[...] = jnp.zeros_like(mem_ref)

    tt = x_ref.shape[0]  # static block extent along time

    def step(i, mem):
        x_t = x_ref[i].astype(jnp.float32)               # (tile_R, LANE)
        reset = (mem > threshold).astype(jnp.float32)    # == previous spike
        mem = beta * mem + x_t - reset * threshold
        spk_ref[i] = (mem > threshold).astype(spk_ref.dtype)
        return mem

    mem_ref[...] = lax.fori_loop(0, tt, step, mem_ref[...], unroll=True)


def leaky_t_wrapper(x, beta=BETA, threshold=THRESHOLD, out_dtype=jnp.float32):
    """x: [T, B, C, H, W] spike train -> spikes [T, B, C, H, W] (out_dtype)."""
    T = x.shape[0]
    P = int(np.prod(x.shape[1:]))

    # Lane-dense re-tiling: [T, P] -> [T, R, LANE], pad P up as needed.
    R = (P + _LANE - 1) // _LANE
    if R <= _MAX_TILE_R:
        tile_r = R                       # full-extent block (always legal)
    else:
        tile_r = _MAX_TILE_R             # multiple of 8 (and 16 for bf16)
        R = ((R + tile_r - 1) // tile_r) * tile_r
    P_pad = R * _LANE

    # Time blocking: largest divisor of T that is <= _MAX_TT.
    TT = 1
    for cand in range(min(T, _MAX_TT), 0, -1):
        if T % cand == 0:
            TT = cand
            break

    x_flat = x.reshape(T, P)
    if P_pad != P:
        x_flat = jnp.pad(x_flat, ((0, 0), (0, P_pad - P)))
    x3 = x_flat.reshape(T, R, _LANE)

    num_spatial = R // tile_r
    num_tblocks = T // TT

    # Explicit scoped-VMEM budget (double-buffered in/out + mem scratch),
    # comfortably inside v5e/v6e/v7x limits given the tile caps above.
    in_bytes = TT * tile_r * _LANE * jnp.dtype(x3.dtype).itemsize
    out_bytes = TT * tile_r * _LANE * jnp.dtype(out_dtype).itemsize
    scratch_bytes = tile_r * _LANE * 4
    vmem_limit = max(2 * (in_bytes + out_bytes) + scratch_bytes + (2 << 20),
                     16 * 1024 * 1024)
    vmem_limit = min(vmem_limit, 32 * 1024 * 1024)

    kernel = functools.partial(
        _leaky_time_kernel, beta=float(beta), threshold=float(threshold))

    spk3 = pl.pallas_call(
        kernel,
        out_shape=jax.ShapeDtypeStruct((T, R, _LANE), out_dtype),
        grid_spec=pltpu.PrefetchScalarGridSpec(
            num_scalar_prefetch=0,
            grid=(num_spatial, num_tblocks),
            in_specs=[
                pl.BlockSpec((TT, tile_r, _LANE), lambda s, tb: (tb, s, 0)),
            ],
            out_specs=pl.BlockSpec((TT, tile_r, _LANE), lambda s, tb: (tb, s, 0)),
            scratch_shapes=[pltpu.VMEM((tile_r, _LANE), jnp.float32)],
        ),
        compiler_params=pltpu.CompilerParams(
            # spatial tiles are independent (megacore-parallel on v7x);
            # time blocks carry the membrane -> sequential.
            dimension_semantics=("parallel", "arbitrary"),
            vmem_limit_bytes=int(vmem_limit),
        ),
    )(x3)

    spk_flat = spk3.reshape(T, P_pad)
    if P_pad != P:
        spk_flat = spk_flat[:, :P]
    return spk_flat.reshape(x.shape)


def _reference(x):
    """Pure-JAX reference of the same Leaky dynamics (for correctness check)."""
    T, B, C, H, W = x.shape

    def step(mem, x_t):
        reset = (mem > THRESHOLD).astype(jnp.float32)
        mem_new = BETA * mem + x_t - reset * THRESHOLD
        spk = (mem_new > THRESHOLD).astype(jnp.float32)
        return mem_new, spk

    mem0 = jnp.zeros((B, C, H, W), jnp.float32)
    _, spks = jax.lax.scan(step, mem0, x.astype(jnp.float32))
    return spks


if __name__ == "__main__":
    key = jax.random.PRNGKey(0)
    T, B, C, H, W = 8, 2, 4, 16, 16
    k1, k2 = jax.random.split(key)
    # Input spike train plus a small analog current so the membrane actually
    # crosses threshold at some steps.
    spikes_in = jax.random.bernoulli(k1, p=0.5, shape=(T, B, C, H, W)).astype(jnp.float32)
    x = spikes_in + 0.3 * jax.random.uniform(k2, (T, B, C, H, W), jnp.float32)

    ref = _reference(x)

    # Default (float32 output — matches the original module's dtype).
    out = jax.block_until_ready(leaky_t_wrapper(x))
    assert out.shape == (T, B, C, H, W)
    np.testing.assert_allclose(np.asarray(out), np.asarray(ref), atol=1e-5, rtol=1e-5)

    # bf16 spike output (exact, since spikes are 0/1) — halves HBM write traffic.
    out_bf16 = jax.block_until_ready(leaky_t_wrapper(x, out_dtype=jnp.bfloat16))
    np.testing.assert_allclose(
        np.asarray(out_bf16).astype(np.float32), np.asarray(ref), atol=1e-5, rtol=1e-5)

    print("KERNEL_OK")
</pallas_src>

<mosaic_0001>
module attributes {stable_mosaic.version = 11 : i64} {
  func.func @_leaky_time_kernel(%arg0: i32, %arg1: i32, %arg2: memref<8x4x512xf32, #tpu.memory_space<vmem>>, %arg3: memref<8x4x512xf32, #tpu.memory_space<vmem>>, %arg4: memref<4x512xf32, #tpu.memory_space<vmem>>) attributes {dimension_semantics = [#tpu.dimension_semantics<parallel>, #tpu.dimension_semantics<arbitrary>], iteration_bounds = array<i64: 1, 1>, scalar_prefetch = 0 : i64, scratch_operands = 1 : i64, tpu.core_type = #tpu.core_type<tc>, window_params = [{transform_indices = @transform_0, window_bounds = array<i64: 8, 4, 512>}, {transform_indices = @transform_1, window_bounds = array<i64: 8, 4, 512>}]} {
    %c0_i32 = arith.constant 0 : i32
    %0 = arith.cmpi eq, %arg1, %c0_i32 : i32
    %1 = arith.extui %0 : i1 to i32
    %c0_i32_0 = arith.constant 0 : i32
    %2 = arith.cmpi ne, %1, %c0_i32_0 : i32
    scf.if %2 {
      %cst_68 = arith.constant 0.000000e+00 : f32
      %173 = vector.broadcast %cst_68 : f32 to vector<4x512xf32>
      %c0_69 = arith.constant 0 : index
      %c0_70 = arith.constant 0 : index
      %174 = vector.load %arg4[%c0_69, %c0_70] : memref<4x512xf32, #tpu.memory_space<vmem>>, vector<4x512xf32>
      tpu.vector_store %arg4[%c0_69, %c0_70], %173 {strides = array<i32>} : memref<4x512xf32, #tpu.memory_space<vmem>>, vector<4x512xf32>,
    } else {
    }
    %c0 = arith.constant 0 : index
    %c0_1 = arith.constant 0 : index
    %3 = vector.load %arg4[%c0, %c0_1] : memref<4x512xf32, #tpu.memory_space<vmem>>, vector<4x512xf32>
    %c0_i32_2 = arith.constant 0 : i32
    %4 = arith.index_cast %c0_i32_2 : i32 to index
    %c0_3 = arith.constant 0 : index
    %c0_4 = arith.constant 0 : index
    %5 = vector.load %arg2[%4, %c0_3, %c0_4] : memref<8x4x512xf32, #tpu.memory_space<vmem>>, vector<1x4x512xf32>
    %6 = vector.shape_cast %5 : vector<1x4x512xf32> to vector<4x512xf32>
    %cst = arith.constant 1.000000e+00 : f32
    %7 = vector.broadcast %cst : f32 to vector<4x512xf32>
    %8 = arith.cmpf ogt, %3, %7 : vector<4x512xf32>
    %9 = arith.extui %8 : vector<4x512xi1> to vector<4x512xi32>
    %10 = arith.sitofp %9 : vector<4x512xi32> to vector<4x512xf32>
    %cst_5 = arith.constant 0.899999976 : f32
    %11 = vector.broadcast %cst_5 : f32 to vector<4x512xf32>
    %12 = arith.mulf %11, %3 : vector<4x512xf32>
    %13 = arith.addf %12, %6 : vector<4x512xf32>
    %cst_6 = arith.constant 1.000000e+00 : f32
    %14 = vector.broadcast %cst_6 : f32 to vector<4x512xf32>
    %15 = arith.mulf %10, %14 : vector<4x512xf32>
    %16 = arith.subf %13, %15 : vector<4x512xf32>
    %cst_7 = arith.constant 1.000000e+00 : f32
    %17 = vector.broadcast %cst_7 : f32 to vector<4x512xf32>
    %18 = arith.cmpf ogt, %16, %17 : vector<4x512xf32>
    %19 = arith.extui %18 : vector<4x512xi1> to vector<4x512xi32>
    %20 = arith.sitofp %19 : vector<4x512xi32> to vector<4x512xf32>
    %21 = arith.index_cast %c0_i32_2 : i32 to index
    %c0_8 = arith.constant 0 : index
    %c0_9 = arith.constant 0 : index
    %22 = vector.load %arg3[%21, %c0_8, %c0_9] : memref<8x4x512xf32, #tpu.memory_space<vmem>>, vector<1x4x512xf32>
    %23 = vector.shape_cast %22 : vector<1x4x512xf32> to vector<4x512xf32>
    %24 = vector.shape_cast %20 : vector<4x512xf32> to vector<1x4x512xf32>
    tpu.vector_store %arg3[%21, %c0_8, %c0_9], %24 {strides = array<i32>} : memref<8x4x512xf32, #tpu.memory_space<vmem>>, vector<1x4x512xf32>,
    %c1_i32 = arith.constant 1 : i32
    %25 = arith.index_cast %c1_i32 : i32 to index
    %c0_10 = arith.constant 0 : index
    %c0_11 = arith.constant 0 : index
    %26 = vector.load %arg2[%25, %c0_10, %c0_11] : memref<8x4x512xf32, #tpu.memory_space<vmem>>, vector<1x4x512xf32>
    %27 = vector.shape_cast %26 : vector<1x4x512xf32> to vector<4x512xf32>
    %cst_12 = arith.constant 1.000000e+00 : f32
    %28 = vector.broadcast %cst_12 : f32 to vector<4x512xf32>
    %29 = arith.cmpf ogt, %16, %28 : vector<4x512xf32>
    %30 = arith.extui %29 : vector<4x512xi1> to vector<4x512xi32>
    %31 = arith.sitofp %30 : vector<4x512xi32> to vector<4x512xf32>
    %cst_13 = arith.constant 0.899999976 : f32
    %32 = vector.broadcast %cst_13 : f32 to vector<4x512xf32>
    %33 = arith.mulf %32, %16 : vector<4x512xf32>
    %34 = arith.addf %33, %27 : vector<4x512xf32>
    %cst_14 = arith.constant 1.000000e+00 : f32
    %35 = vector.broadcast %cst_14 : f32 to vector<4x512xf32>
    %36 = arith.mulf %31, %35 : vector<4x512xf32>
    %37 = arith.subf %34, %36 : vector<4x512xf32>
    %cst_15 = arith.constant 1.000000e+00 : f32
    %38 = vector.broadcast %cst_15 : f32 to vector<4x512xf32>
    %39 = arith.cmpf ogt, %37, %38 : vector<4x512xf32>
    %40 = arith.extui %39 : vector<4x512xi1> to vector<4x512xi32>
    %41 = arith.sitofp %40 : vector<4x512xi32> to vector<4x512xf32>
    %42 = arith.index_cast %c1_i32 : i32 to index
    %c0_16 = arith.constant 0 : index
    %c0_17 = arith.constant 0 : index
    %43 = vector.load %arg3[%42, %c0_16, %c0_17] : memref<8x4x512xf32, #tpu.memory_space<vmem>>, vector<1x4x512xf32>
    %44 = vector.shape_cast %43 : vector<1x4x512xf32> to vector<4x512xf32>
    %45 = vector.shape_cast %41 : vector<4x512xf32> to vector<1x4x512xf32>
    tpu.vector_store %arg3[%42, %c0_16, %c0_17], %45 {strides = array<i32>} : memref<8x4x512xf32, #tpu.memory_space<vmem>>, vector<1x4x512xf32>,
    %c2_i32 = arith.constant 2 : i32
    %46 = arith.index_cast %c2_i32 : i32 to index
    %c0_18 = arith.constant 0 : index
    %c0_19 = arith.constant 0 : index
    %47 = vector.load %arg2[%46, %c0_18, %c0_19] : memref<8x4x512xf32, #tpu.memory_space<vmem>>, vector<1x4x512xf32>
    %48 = vector.shape_cast %47 : vector<1x4x512xf32> to vector<4x512xf32>
    %cst_20 = arith.constant 1.000000e+00 : f32
    %49 = vector.broadcast %cst_20 : f32 to vector<4x512xf32>
    %50 = arith.cmpf ogt, %37, %49 : vector<4x512xf32>
    %51 = arith.extui %50 : vector<4x512xi1> to vector<4x512xi32>
    %52 = arith.sitofp %51 : vector<4x512xi32> to vector<4x512xf32>
    %cst_21 = arith.constant 0.899999976 : f32
    %53 = vector.broadcast %cst_21 : f32 to vector<4x512xf32>
    %54 = arith.mulf %53, %37 : vector<4x512xf32>
    %55 = arith.addf %54, %48 : vector<4x512xf32>
    %cst_22 = arith.constant 1.000000e+00 : f32
    %56 = vector.broadcast %cst_22 : f32 to vector<4x512xf32>
    %57 = arith.mulf %52, %56 : vector<4x512xf32>
    %58 = arith.subf %55, %57 : vector<4x512xf32>
    %cst_23 = arith.constant 1.000000e+00 : f32
    %59 = vector.broadcast %cst_23 : f32 to vector<4x512xf32>
    %60 = arith.cmpf ogt, %58, %59 : vector<4x512xf32>
    %61 = arith.extui %60 : vector<4x512xi1> to vector<4x512xi32>
    %62 = arith.sitofp %61 : vector<4x512xi32> to vector<4x512xf32>
    %63 = arith.index_cast %c2_i32 : i32 to index
    %c0_24 = arith.constant 0 : index
    %c0_25 = arith.constant 0 : index
    %64 = vector.load %arg3[%63, %c0_24, %c0_25] : memref<8x4x512xf32, #tpu.memory_space<vmem>>, vector<1x4x512xf32>
    %65 = vector.shape_cast %64 : vector<1x4x512xf32> to vector<4x512xf32>
    %66 = vector.shape_cast %62 : vector<4x512xf32> to vector<1x4x512xf32>
    tpu.vector_store %arg3[%63, %c0_24, %c0_25], %66 {strides = array<i32>} : memref<8x4x512xf32, #tpu.memory_space<vmem>>, vector<1x4x512xf32>,
    %c3_i32 = arith.constant 3 : i32
    %67 = arith.index_cast %c3_i32 : i32 to index
    %c0_26 = arith.constant 0 : index
    %c0_27 = arith.constant 0 : index
    %68 = vector.load %arg2[%67, %c0_26, %c0_27] : memref<8x4x512xf32, #tpu.memory_space<vmem>>, vector<1x4x512xf32>
    %69 = vector.shape_cast %68 : vector<1x4x512xf32> to vector<4x512xf32>
    %cst_28 = arith.constant 1.000000e+00 : f32
    %70 = vector.broadcast %cst_28 : f32 to vector<4x512xf32>
    %71 = arith.cmpf ogt, %58, %70 : vector<4x512xf32>
    %72 = arith.extui %71 : vector<4x512xi1> to vector<4x512xi32>
    %73 = arith.sitofp %72 : vector<4x512xi32> to vector<4x512xf32>
    %cst_29 = arith.constant 0.899999976 : f32
    %74 = vector.broadcast %cst_29 : f32 to vector<4x512xf32>
    %75 = arith.mulf %74, %58 : vector<4x512xf32>
    %76 = arith.addf %75, %69 : vector<4x512xf32>
    %cst_30 = arith.constant 1.000000e+00 : f32
    %77 = vector.broadcast %cst_30 : f32 to vector<4x512xf32>
    %78 = arith.mulf %73, %77 : vector<4x512xf32>
    %79 = arith.subf %76, %78 : vector<4x512xf32>
    %cst_31 = arith.constant 1.000000e+00 : f32
    %80 = vector.broadcast %cst_31 : f32 to vector<4x512xf32>
    %81 = arith.cmpf ogt, %79, %80 : vector<4x512xf32>
    %82 = arith.extui %81 : vector<4x512xi1> to vector<4x512xi32>
    %83 = arith.sitofp %82 : vector<4x512xi32> to vector<4x512xf32>
    %84 = arith.index_cast %c3_i32 : i32 to index
    %c0_32 = arith.constant 0 : index
    %c0_33 = arith.constant 0 : index
    %85 = vector.load %arg3[%84, %c0_32, %c0_33] : memref<8x4x512xf32, #tpu.memory_space<vmem>>, vector<1x4x512xf32>
    %86 = vector.shape_cast %85 : vector<1x4x512xf32> to vector<4x512xf32>
    %87 = vector.shape_cast %83 : vector<4x512xf32> to vector<1x4x512xf32>
    tpu.vector_store %arg3[%84, %c0_32, %c0_33], %87 {strides = array<i32>} : memref<8x4x512xf32, #tpu.memory_space<vmem>>, vector<1x4x512xf32>,
    %c4_i32 = arith.constant 4 : i32
    %88 = arith.index_cast %c4_i32 : i32 to index
    %c0_34 = arith.constant 0 : index
    %c0_35 = arith.constant 0 : index
    %89 = vector.load %arg2[%88, %c0_34, %c0_35] : memref<8x4x512xf32, #tpu.memory_space<vmem>>, vector<1x4x512xf32>
    %90 = vector.shape_cast %89 : vector<1x4x512xf32> to vector<4x512xf32>
    %cst_36 = arith.constant 1.000000e+00 : f32
    %91 = vector.broadcast %cst_36 : f32 to vector<4x512xf32>
    %92 = arith.cmpf ogt, %79, %91 : vector<4x512xf32>
    %93 = arith.extui %92 : vector<4x512xi1> to vector<4x512xi32>
    %94 = arith.sitofp %93 : vector<4x512xi32> to vector<4x512xf32>
    %cst_37 = arith.constant 0.899999976 : f32
    %95 = vector.broadcast %cst_37 : f32 to vector<4x512xf32>
    %96 = arith.mulf %95, %79 : vector<4x512xf32>
    %97 = arith.addf %96, %90 : vector<4x512xf32>
    %cst_38 = arith.constant 1.000000e+00 : f32
    %98 = vector.broadcast %cst_38 : f32 to vector<4x512xf32>
    %99 = arith.mulf %94, %98 : vector<4x512xf32>
    %100 = arith.subf %97, %99 : vector<4x512xf32>
    %cst_39 = arith.constant 1.000000e+00 : f32
    %101 = vector.broadcast %cst_39 : f32 to vector<4x512xf32>
    %102 = arith.cmpf ogt, %100, %101 : vector<4x512xf32>
    %103 = arith.extui %102 : vector<4x512xi1> to vector<4x512xi32>
    %104 = arith.sitofp %103 : vector<4x512xi32> to vector<4x512xf32>
    %105 = arith.index_cast %c4_i32 : i32 to index
    %c0_40 = arith.constant 0 : index
    %c0_41 = arith.constant 0 : index
    %106 = vector.load %arg3[%105, %c0_40, %c0_41] : memref<8x4x512xf32, #tpu.memory_space<vmem>>, vector<1x4x512xf32>
    %107 = vector.shape_cast %106 : vector<1x4x512xf32> to vector<4x512xf32>
    %108 = vector.shape_cast %104 : vector<4x512xf32> to vector<1x4x512xf32>
    tpu.vector_store %arg3[%105, %c0_40, %c0_41], %108 {strides = array<i32>} : memref<8x4x512xf32, #tpu.memory_space<vmem>>, vector<1x4x512xf32>,
    %c5_i32 = arith.constant 5 : i32
    %109 = arith.index_cast %c5_i32 : i32 to index
    %c0_42 = arith.constant 0 : index
    %c0_43 = arith.constant 0 : index
    %110 = vector.load %arg2[%109, %c0_42, %c0_43] : memref<8x4x512xf32, #tpu.memory_space<vmem>>, vector<1x4x512xf32>
    %111 = vector.shape_cast %110 : vector<1x4x512xf32> to vector<4x512xf32>
    %cst_44 = arith.constant 1.000000e+00 : f32
    %112 = vector.broadcast %cst_44 : f32 to vector<4x512xf32>
    %113 = arith.cmpf ogt, %100, %112 : vector<4x512xf32>
    %114 = arith.extui %113 : vector<4x512xi1> to vector<4x512xi32>
    %115 = arith.sitofp %114 : vector<4x512xi32> to vector<4x512xf32>
    %cst_45 = arith.constant 0.899999976 : f32
    %116 = vector.broadcast %cst_45 : f32 to vector<4x512xf32>
    %117 = arith.mulf %116, %100 : vector<4x512xf32>
    %118 = arith.addf %117, %111 : vector<4x512xf32>
    %cst_46 = arith.constant 1.000000e+00 : f32
    %119 = vector.broadcast %cst_46 : f32 to vector<4x512xf32>
    %120 = arith.mulf %115, %119 : vector<4x512xf32>
    %121 = arith.subf %118, %120 : vector<4x512xf32>
    %cst_47 = arith.constant 1.000000e+00 : f32
    %122 = vector.broadcast %cst_47 : f32 to vector<4x512xf32>
    %123 = arith.cmpf ogt, %121, %122 : vector<4x512xf32>
    %124 = arith.extui %123 : vector<4x512xi1> to vector<4x512xi32>
    %125 = arith.sitofp %124 : vector<4x512xi32> to vector<4x512xf32>
    %126 = arith.index_cast %c5_i32 : i32 to index
    %c0_48 = arith.constant 0 : index
    %c0_49 = arith.constant 0 : index
    %127 = vector.load %arg3[%126, %c0_48, %c0_49] : memref<8x4x512xf32, #tpu.memory_space<vmem>>, vector<1x4x512xf32>
    %128 = vector.shape_cast %127 : vector<1x4x512xf32> to vector<4x512xf32>
    %129 = vector.shape_cast %125 : vector<4x512xf32> to vector<1x4x512xf32>
    tpu.vector_store %arg3[%126, %c0_48, %c0_49], %129 {strides = array<i32>} : memref<8x4x512xf32, #tpu.memory_space<vmem>>, vector<1x4x512xf32>,
    %c6_i32 = arith.constant 6 : i32
    %130 = arith.index_cast %c6_i32 : i32 to index
    %c0_50 = arith.constant 0 : index
    %c0_51 = arith.constant 0 : index
    %131 = vector.load %arg2[%130, %c0_50, %c0_51] : memref<8x4x512xf32, #tpu.memory_space<vmem>>, vector<1x4x512xf32>
    %132 = vector.shape_cast %131 : vector<1x4x512xf32> to vector<4x512xf32>
    %cst_52 = arith.constant 1.000000e+00 : f32
    %133 = vector.broadcast %cst_52 : f32 to vector<4x512xf32>
    %134 = arith.cmpf ogt, %121, %133 : vector<4x512xf32>
    %135 = arith.extui %134 : vector<4x512xi1> to vector<4x512xi32>
    %136 = arith.sitofp %135 : vector<4x512xi32> to vector<4x512xf32>
    %cst_53 = arith.constant 0.899999976 : f32
    %137 = vector.broadcast %cst_53 : f32 to vector<4x512xf32>
    %138 = arith.mulf %137, %121 : vector<4x512xf32>
    %139 = arith.addf %138, %132 : vector<4x512xf32>
    %cst_54 = arith.constant 1.000000e+00 : f32
    %140 = vector.broadcast %cst_54 : f32 to vector<4x512xf32>
    %141 = arith.mulf %136, %140 : vector<4x512xf32>
    %142 = arith.subf %139, %141 : vector<4x512xf32>
    %cst_55 = arith.constant 1.000000e+00 : f32
    %143 = vector.broadcast %cst_55 : f32 to vector<4x512xf32>
    %144 = arith.cmpf ogt, %142, %143 : vector<4x512xf32>
    %145 = arith.extui %144 : vector<4x512xi1> to vector<4x512xi32>
    %146 = arith.sitofp %145 : vector<4x512xi32> to vector<4x512xf32>
    %147 = arith.index_cast %c6_i32 : i32 to index
    %c0_56 = arith.constant 0 : index
    %c0_57 = arith.constant 0 : index
    %148 = vector.load %arg3[%147, %c0_56, %c0_57] : memref<8x4x512xf32, #tpu.memory_space<vmem>>, vector<1x4x512xf32>
    %149 = vector.shape_cast %148 : vector<1x4x512xf32> to vector<4x512xf32>
    %150 = vector.shape_cast %146 : vector<4x512xf32> to vector<1x4x512xf32>
    tpu.vector_store %arg3[%147, %c0_56, %c0_57], %150 {strides = array<i32>} : memref<8x4x512xf32, #tpu.memory_space<vmem>>, vector<1x4x512xf32>,
    %c7_i32 = arith.constant 7 : i32
    %151 = arith.index_cast %c7_i32 : i32 to index
    %c0_58 = arith.constant 0 : index
    %c0_59 = arith.constant 0 : index
    %152 = vector.load %arg2[%151, %c0_58, %c0_59] : memref<8x4x512xf32, #tpu.memory_space<vmem>>, vector<1x4x512xf32>
    %153 = vector.shape_cast %152 : vector<1x4x512xf32> to vector<4x512xf32>
    %cst_60 = arith.constant 1.000000e+00 : f32
    %154 = vector.broadcast %cst_60 : f32 to vector<4x512xf32>
    %155 = arith.cmpf ogt, %142, %154 : vector<4x512xf32>
    %156 = arith.extui %155 : vector<4x512xi1> to vector<4x512xi32>
    %157 = arith.sitofp %156 : vector<4x512xi32> to vector<4x512xf32>
    %cst_61 = arith.constant 0.899999976 : f32
    %158 = vector.broadcast %cst_61 : f32 to vector<4x512xf32>
    %159 = arith.mulf %158, %142 : vector<4x512xf32>
    %160 = arith.addf %159, %153 : vector<4x512xf32>
    %cst_62 = arith.constant 1.000000e+00 : f32
    %161 = vector.broadcast %cst_62 : f32 to vector<4x512xf32>
    %162 = arith.mulf %157, %161 : vector<4x512xf32>
    %163 = arith.subf %160, %162 : vector<4x512xf32>
    %cst_63 = arith.constant 1.000000e+00 : f32
    %164 = vector.broadcast %cst_63 : f32 to vector<4x512xf32>
    %165 = arith.cmpf ogt, %163, %164 : vector<4x512xf32>
    %166 = arith.extui %165 : vector<4x512xi1> to vector<4x512xi32>
    %167 = arith.sitofp %166 : vector<4x512xi32> to vector<4x512xf32>
    %168 = arith.index_cast %c7_i32 : i32 to index
    %c0_64 = arith.constant 0 : index
    %c0_65 = arith.constant 0 : index
    %169 = vector.load %arg3[%168, %c0_64, %c0_65] : memref<8x4x512xf32, #tpu.memory_space<vmem>>, vector<1x4x512xf32>
    %170 = vector.shape_cast %169 : vector<1x4x512xf32> to vector<4x512xf32>
    %171 = vector.shape_cast %167 : vector<4x512xf32> to vector<1x4x512xf32>
    tpu.vector_store %arg3[%168, %c0_64, %c0_65], %171 {strides = array<i32>} : memref<8x4x512xf32, #tpu.memory_space<vmem>>, vector<1x4x512xf32>,
    %c8_i32 = arith.constant 8 : i32
    %c0_66 = arith.constant 0 : index
    %c0_67 = arith.constant 0 : index
    %172 = vector.load %arg4[%c0_66, %c0_67] : memref<4x512xf32, #tpu.memory_space<vmem>>, vector<4x512xf32>
    tpu.vector_store %arg4[%c0_66, %c0_67], %163 {strides = array<i32>} : memref<4x512xf32, #tpu.memory_space<vmem>>, vector<4x512xf32>,
    return
  }
  func.func @transform_0(%arg0: i32, %arg1: i32) -> (i32, i32, i32) {
    %c0_i32 = arith.constant 0 : i32
    %c0_i32_0 = arith.constant 0 : i32
    return %arg1, %arg0, %c0_i32 : i32, i32, i32
  }
  func.func @transform_1(%arg0: i32, %arg1: i32) -> (i32, i32, i32) {
    %c0_i32 = arith.constant 0 : i32
    %c0_i32_0 = arith.constant 0 : i32
    return %arg1, %arg0, %c0_i32 : i32, i32, i32
  }
}

</mosaic_0001>

<bundles_post_ra>
// kernel: tpu_custom_call.1
= control target key start
LH: loop header
LB: loop body
LE: loop exit
PB: predicated region body
PF: predicated region fallthrough
CT: control target
= control target key end

     0   :  { %6 = vsyncpa [#allocation4], 0  ;;  %s308_s0 = inlined_call_operand.hbm [shape: f32[8,4,512], index: 0, kind: input, shape index: {}]   ;;  %s309_s1 = inlined_call_operand.hbm [shape: f32[8,4,512], index: 1, kind: output, shape index: {}]  }
   0x1   :  { %7 = vsyncpa [#allocation5], 0  ;;  %s265_s6 = smov [#allocation3]  }
   0x2   :  { %s13_s7 = sshll.u32 %s265_s6, 4  ;;  %s14_s7 = int_to_ptr.vmem [resolvable:$true] %s13_s7 }
   0x3   :  { %s229_s8 = scalar_lea.vmem %s14_s7, 2048  ;;  %p234_p1 = scmp.lt.s32.totalorder %s14_s7, %s14_s7 }
   0x4   :  { %p230_p0 = scmp.ne.s32.totalorder %s14_s7, %s229_s8  ;;  %p235_p2 = scmp.lt.s32.totalorder %s229_s8, %s229_s8 }
   0x6   :  { %p236_p3 = por %p235_p2, %p234_p1 }
   0x8   :  { %p237_p4 = pnand %p236_p3, %p230_p0 }
   0xa   :  { %240 = shalt.err (!%p237_p4)
}
   0xb   :  { %s266_s9 = smov 256   ;;  %s267_s10 = smov 16  }
   0xc   :  { %19 = dma.hbm_to_vmem [thread:$0]  %s308_s0, 2048, %s14_s7, [#allocation4], %s266_s9, %s266_s9, %s267_s10  }
   0xd   :  { %261 = dma.done.wait [#allocation4], 2048  }
   0xe   :  { %262 = vsyncadd [#allocation4], 4294965248  ;;  %v31_v0 = vld [vmem:[#allocation3] sm:$0xff]  ;;  %v54_v1 = vld [vmem:[#allocation3 + $0x10] sm:$0xff]  ;;  %v268_v5 = vmov 0.0   ;;  %s269_s0 = smov [#allocation6]  }
   0xf   :  { %v32_v2 = vld [vmem:[#allocation3 + $0x8] sm:$0xff]  ;;  %vm45_vm0 = vcmp.gt.f32.partialorder %v31_v0, 1.0  ;;  %v56_v3 = vmul.f32 0.9, %v31_v0  ;;  %v55_v4 = vld [vmem:[#allocation3 + $0x18] sm:$0xff]  ;;  %v72_v13 = vld [vmem:[#allocation3 + $0x20] sm:$0xff] }
  0x10   :  { %vm46_vm1 = vcmp.gt.f32.partialorder %v32_v2, 1.0  ;;  %v200_v6 = vsel %vm45_vm0, 1.0, %v268_v5  ;;  %v57_v8 = vmul.f32 0.9, %v32_v2  ;;  %v73_v15 = vld [vmem:[#allocation3 + $0x28] sm:$0xff]  ;;  %v90_v23 = vld [vmem:[#allocation3 + $0x30] sm:$0xff] }
  0x11   :  { %v201_v7 = vsel %vm46_vm1, 1.0, %v268_v5  ;;  %51 = vst [vmem:[#allocation6] sm:$0xff] %v200_v6  ;;  %v58_v9 = vadd.f32 %v56_v3, %v54_v1  ;;  %v91_v25 = vld [vmem:[#allocation3 + $0x38] sm:$0xff]  ;;  %v108_v33 = vld [vmem:[#allocation3 + $0x40] sm:$0xff]  ;;  %v109_v35 = vld [vmem:[#allocation3 + $0x48] sm:$0xff]  ;;  %s186_s13 = sshll.u32 %s269_s0, 4  ;;  %s187_s13 = int_to_ptr.vmem [resolvable:$true] %s186_s13 }
  0x12   :  { %52 = vst [vmem:[#allocation6 + $0x8] sm:$0xff] %v201_v7  ;;  %v59_v10 = vadd.f32 %v57_v8, %v55_v4  ;;  %v126_v43 = vld [vmem:[#allocation3 + $0x50] sm:$0xff]  ;;  %v127_v45 = vld [vmem:[#allocation3 + $0x58] sm:$0xff]  ;;  %v144_v53 = vld [vmem:[#allocation3 + $0x60] sm:$0xff]  ;;  %s241_s14 = scalar_lea.vmem %s187_s13, 2048  ;;  %p246_p6 = scmp.lt.s32.totalorder %s187_s13, %s187_s13 }
  0x13   :  { %v60_v11 = vsub.f32 %v58_v9, %v200_v6  ;;  %v145_v55 = vld [vmem:[#allocation3 + $0x68] sm:$0xff]  ;;  %v162_v63 = vld [vmem:[#allocation3 + $0x70] sm:$0xff]  ;;  %v163_v1 = vld [vmem:[#allocation3 + $0x78] sm:$0xff]  ;;  %p242_p5 = scmp.ne.s32.totalorder %s187_s13, %s241_s14  ;;  %p247_p7 = scmp.lt.s32.totalorder %s241_s14, %s241_s14 }
  0x14   :  { %v61_v12 = vsub.f32 %v59_v10, %v201_v7 }
  0x15   :  { %v74_v14 = vmul.f32 0.9, %v60_v11  ;;  %vm62_vm2 = vcmp.gt.f32.partialorder %v60_v11, 1.0  ;;  %p248_p8 = por %p247_p7, %p246_p6 }
  0x16   :  { %v75_v16 = vmul.f32 0.9, %v61_v12  ;;  %v202_v17 = vsel %vm62_vm2, 1.0, %v268_v5  ;;  %vm63_vm3 = vcmp.gt.f32.partialorder %v61_v12, 1.0 }
  0x17   :  { %69 = vst [vmem:[#allocation6 + $0x10] sm:$0xff] %v202_v17  ;;  %v76_v18 = vadd.f32 %v74_v14, %v72_v13  ;;  %v203_v19 = vsel %vm63_vm3, 1.0, %v268_v5  ;;  %p249_p9 = pnand %p248_p8, %p242_p5 }
  0x18   :  { %70 = vst [vmem:[#allocation6 + $0x18] sm:$0xff] %v203_v19  ;;  %v77_v20 = vadd.f32 %v75_v16, %v73_v15 }
  0x19   :  { %v78_v21 = vsub.f32 %v76_v18, %v202_v17 }
  0x1a   :  { %v79_v22 = vsub.f32 %v77_v20, %v203_v19 }
  0x1b   :  { %v92_v24 = vmul.f32 0.9, %v78_v21  ;;  %vm80_vm4 = vcmp.gt.f32.partialorder %v78_v21, 1.0 }
  0x1c   :  { %v93_v26 = vmul.f32 0.9, %v79_v22  ;;  %v204_v27 = vsel %vm80_vm4, 1.0, %v268_v5  ;;  %vm81_vm5 = vcmp.gt.f32.partialorder %v79_v22, 1.0 }
  0x1d   :  { %87 = vst [vmem:[#allocation6 + $0x20] sm:$0xff] %v204_v27  ;;  %v94_v28 = vadd.f32 %v92_v24, %v90_v23  ;;  %v205_v29 = vsel %vm81_vm5, 1.0, %v268_v5 }
  0x1e   :  { %88 = vst [vmem:[#allocation6 + $0x28] sm:$0xff] %v205_v29  ;;  %v95_v30 = vadd.f32 %v93_v26, %v91_v25 }
  0x1f   :  { %v96_v31 = vsub.f32 %v94_v28, %v204_v27 }
  0x20   :  { %v97_v32 = vsub.f32 %v95_v30, %v205_v29 }
  0x21   :  { %v110_v34 = vmul.f32 0.9, %v96_v31  ;;  %vm98_vm6 = vcmp.gt.f32.partialorder %v96_v31, 1.0 }
  0x22   :  { %v111_v36 = vmul.f32 0.9, %v97_v32  ;;  %v206_v37 = vsel %vm98_vm6, 1.0, %v268_v5  ;;  %vm99_vm7 = vcmp.gt.f32.partialorder %v97_v32, 1.0 }
  0x23   :  { %105 = vst [vmem:[#allocation6 + $0x30] sm:$0xff] %v206_v37  ;;  %v112_v38 = vadd.f32 %v110_v34, %v108_v33  ;;  %v207_v39 = vsel %vm99_vm7, 1.0, %v268_v5 }
  0x24   :  { %106 = vst [vmem:[#allocation6 + $0x38] sm:$0xff] %v207_v39  ;;  %v113_v40 = vadd.f32 %v111_v36, %v109_v35 }
  0x25   :  { %v114_v41 = vsub.f32 %v112_v38, %v206_v37 }
  0x26   :  { %v115_v42 = vsub.f32 %v113_v40, %v207_v39 }
  0x27   :  { %v128_v44 = vmul.f32 0.9, %v114_v41  ;;  %vm116_vm8 = vcmp.gt.f32.partialorder %v114_v41, 1.0 }
  0x28   :  { %v129_v46 = vmul.f32 0.9, %v115_v42  ;;  %v208_v47 = vsel %vm116_vm8, 1.0, %v268_v5  ;;  %vm117_vm9 = vcmp.gt.f32.partialorder %v115_v42, 1.0 }
  0x29   :  { %123 = vst [vmem:[#allocation6 + $0x40] sm:$0xff] %v208_v47  ;;  %v130_v48 = vadd.f32 %v128_v44, %v126_v43  ;;  %v209_v49 = vsel %vm117_vm9, 1.0, %v268_v5 }
  0x2a   :  { %124 = vst [vmem:[#allocation6 + $0x48] sm:$0xff] %v209_v49  ;;  %v131_v50 = vadd.f32 %v129_v46, %v127_v45 }
  0x2b   :  { %v132_v51 = vsub.f32 %v130_v48, %v208_v47 }
  0x2c   :  { %v133_v52 = vsub.f32 %v131_v50, %v209_v49 }
  0x2d   :  { %v146_v54 = vmul.f32 0.9, %v132_v51  ;;  %vm134_vm10 = vcmp.gt.f32.partialorder %v132_v51, 1.0 }
  0x2e   :  { %v147_v56 = vmul.f32 0.9, %v133_v52  ;;  %v210_v57 = vsel %vm134_vm10, 1.0, %v268_v5  ;;  %vm135_vm11 = vcmp.gt.f32.partialorder %v133_v52, 1.0 }
  0x2f   :  { %141 = vst [vmem:[#allocation6 + $0x50] sm:$0xff] %v210_v57  ;;  %v148_v58 = vadd.f32 %v146_v54, %v144_v53  ;;  %v211_v59 = vsel %vm135_vm11, 1.0, %v268_v5 }
  0x30   :  { %142 = vst [vmem:[#allocation6 + $0x58] sm:$0xff] %v211_v59  ;;  %v149_v60 = vadd.f32 %v147_v56, %v145_v55 }
  0x31   :  { %v150_v61 = vsub.f32 %v148_v58, %v210_v57 }
  0x32   :  { %v151_v62 = vsub.f32 %v149_v60, %v211_v59 }
  0x33   :  { %v164_v0 = vmul.f32 0.9, %v150_v61  ;;  %vm152_vm12 = vcmp.gt.f32.partialorder %v150_v61, 1.0 }
  0x34   :  { %v165_v2 = vmul.f32 0.9, %v151_v62  ;;  %v212_v3 = vsel %vm152_vm12, 1.0, %v268_v5  ;;  %vm153_vm13 = vcmp.gt.f32.partialorder %v151_v62, 1.0 }
  0x35   :  { %159 = vst [vmem:[#allocation6 + $0x60] sm:$0xff] %v212_v3  ;;  %v166_v4 = vadd.f32 %v164_v0, %v162_v63  ;;  %v213_v6 = vsel %vm153_vm13, 1.0, %v268_v5 }
  0x36   :  { %160 = vst [vmem:[#allocation6 + $0x68] sm:$0xff] %v213_v6  ;;  %v167_v7 = vadd.f32 %v165_v2, %v163_v1 }
  0x37   :  { %v168_v8 = vsub.f32 %v166_v4, %v212_v3 }
  0x38   :  { %v169_v9 = vsub.f32 %v167_v7, %v213_v6 }
  0x39   :  { %vm170_vm14 = vcmp.gt.f32.partialorder %v168_v8, 1.0 }
  0x3a   :  { %v214_v10 = vsel %vm170_vm14, 1.0, %v268_v5  ;;  %vm171_vm15 = vcmp.gt.f32.partialorder %v169_v9, 1.0 }
  0x3b   :  { %177 = vst [vmem:[#allocation6 + $0x70] sm:$0xff] %v214_v10  ;;  %v215_v11 = vsel %vm171_vm15, 1.0, %v268_v5 }
  0x3c   :  { %178 = vst [vmem:[#allocation6 + $0x78] sm:$0xff] %v215_v11 }
  0x3d   :  { %252 = shalt.err (!%p249_p9)
}
  0x3e   :  { %192 = dma.vmem_to_hbm [thread:$0]  %s187_s13, 2048, %s309_s1, [#allocation5], %s266_s9, %s266_s9, %s267_s10  }
  0x3f   :  { %263 = dma.done.wait [#allocation5], 2048  }
  0x40   :  { %264 = vsyncadd [#allocation5], 4294965248 }
  0x41   :  { %196 = vsyncpa [#allocation4], 1 }
  0x42   :  { %197 = vsyncpa [#allocation5], 1 }

</bundles_post_ra>
